<compile_context>
chip_gen: v7x
topology: tpu7x:2x2x1
jax: 0.10.0
libtpu: 0.0.40
codegen_flags: <defaults>
</compile_context>

<pallas_src>
import jax
import jax.numpy as jnp
from jax import lax
from jax.experimental import pallas as pl
from jax.experimental.pallas import tpu as pltpu


def _round_up(x, m):
    return (x + m - 1) // m * m


def _make_kernel(tile, vocab, num_mods, ids_are_per_tile):
    rows_per_group = 8
    n_groups = tile // rows_per_group

    def kernel(mod_ids_smem, ids_smem, ids_vec_ref, table_ref, mod_emb_ref, out_ref):
        # mod_ids_smem: (num_mods,)  int32 SMEM (scalar prefetch)
        # ids_smem:     (tile,) SMEM block   [optimized]  or (N_pad,) SMEM prefetch [fallback]
        # ids_vec_ref:  (tile, 1)    int32 VMEM - this tile's ids (vector masks)
        # table_ref:    (V, H)       VMEM-resident embedding table
        # mod_emb_ref:  (num_mods,H) replacement embeddings
        # out_ref:      (tile, H)    output tile (gather target - no scratch)
        tile_base = 0 if ids_are_per_tile else pl.program_id(0) * tile

        def gather_group(g, carry):
            base = pl.multiple_of(g * rows_per_group, rows_per_group)
            # Scalar id reads grouped ahead of the vector copies; clamp so an
            # out-of-range id can never index outside the VMEM table block.
            toks = [
                jnp.minimum(jnp.maximum(ids_smem[tile_base + base + u], 0), vocab - 1)
                for u in range(rows_per_group)
            ]
            for u in range(rows_per_group):
                out_ref[pl.ds(base + u, 1), :] = table_ref[pl.ds(toks[u], 1), :]
            return carry

        # 8-row-unrolled gather straight into the output tile.
        lax.fori_loop(0, n_groups, gather_group, 0,
                      unroll=True if n_groups <= 4 else False)

        # Vectorized per-token-id overrides (later modifications win), one broadcast
        # compare + select over the whole (tile, H) tile per modification.
        rows = out_ref[...]
        ids_vec = ids_vec_ref[...]                                     # (tile, 1)
        for j in range(num_mods):
            hit = ids_vec == mod_ids_smem[j]                           # (tile, 1)
            new_row = mod_emb_ref[pl.ds(j, 1), :].astype(rows.dtype)   # (1, H)
            rows = jnp.where(hit, new_row, rows)
        out_ref[...] = rows

    return kernel


def custom_embedding(input_ids, embedding_table, mod_token_ids, mod_embeddings,
                     tile_tokens=256):
    """
    input_ids:       (B, S) int32
    embedding_table: (V, H) float
    mod_token_ids:   (num_mods,) int32
    mod_embeddings:  (num_mods, H) float
    returns:         (B, S, H) with embedding_table's dtype
    """
    B, S = input_ids.shape
    V, H = embedding_table.shape
    out_dtype = embedding_table.dtype
    itemsize = jnp.dtype(out_dtype).itemsize
    row_bytes = H * itemsize
    table_bytes = V * H * itemsize

    num_mods = int(mod_token_ids.shape[0])
    if num_mods == 0:
        # Keep the kernel uniform: sentinel token id that never matches valid ids.
        mod_token_ids = jnp.full((1,), -1, dtype=jnp.int32)
        mod_embeddings = jnp.zeros((1, H), dtype=out_dtype)
        num_mods = 1

    N = B * S

    # ---- generation-aware VMEM budget -------------------------------------------
    try:
        vmem_cap = int(pltpu.get_tpu_info().vmem_capacity_bytes)
    except Exception:
        vmem_cap = 64 << 20       # conservative: v7x per-TensorCore VMEM
    vmem_budget = max(vmem_cap - (8 << 20), 16 << 20)

    # ---- token-tile size: amortize per-step overhead, respect VMEM --------------
    t_lo = _round_up(max(1, (512 << 10) // row_bytes), 8)      # tile >= ~512 KiB
    t_hi = max(8, ((8 << 20) // (2 * row_bytes)) // 8 * 8)     # 2x out tile <= ~8 MiB
    T = max(int(tile_tokens), t_lo)
    T = min(T, t_hi, _round_up(N, 8))
    T = max(T, 8)
    N_pad = _round_up(N, T)
    n_tiles = N_pad // T

    ids_flat = input_ids.reshape(N).astype(jnp.int32)
    if N_pad != N:
        ids_flat = jnp.concatenate(
            [ids_flat, jnp.zeros((N_pad - N,), dtype=jnp.int32)])
    ids_col = ids_flat.reshape(N_pad, 1)        # VMEM copy for vectorized masks

    mod_token_ids = mod_token_ids.astype(jnp.int32)
    mod_embeddings = mod_embeddings.astype(out_dtype)

    cost = pl.CostEstimate(
        flops=0,
        transcendentals=0,
        bytes_accessed=int(table_bytes + num_mods * (row_bytes + 4)
                           + N_pad * (row_bytes + 8)),
    )

    def build(optimized):
        kernel = _make_kernel(T, V, num_mods, ids_are_per_tile=optimized)
        resident_kw = dict(pipeline_mode=pl.Buffered(1)) if optimized else {}
        idx_tile_2d = lambda i, *_: (i, 0)
        idx_const_2d = lambda i, *_: (0, 0)

        in_specs = []
        if optimized:
            # Per-tile ids streamed through SMEM -> bounded SMEM use at any B*S.
            in_specs.append(pl.BlockSpec((T,), lambda i, *_: (i,),
                                         memory_space=pltpu.MemorySpace.SMEM))
        in_specs += [
            # This tile's ids as a (T, 1) VMEM block (broadcast masks over (T, H)).
            pl.BlockSpec((T, 1), idx_tile_2d),
            # Embedding table: constant block index -> DMA'd once, VMEM-resident.
            pl.BlockSpec((V, H), idx_const_2d, **resident_kw),
            # Replacement embeddings: tiny, resident.
            pl.BlockSpec((num_mods, H), idx_const_2d, **resident_kw),
        ]

        grid_spec = pltpu.PrefetchScalarGridSpec(
            num_scalar_prefetch=1 if optimized else 2,
            grid=(n_tiles,),
            in_specs=in_specs,
            out_specs=pl.BlockSpec((T, H), idx_tile_2d),
        )

        n_resident_bufs = 1 if optimized else 2
        est_vmem = (n_resident_bufs * (table_bytes + num_mods * row_bytes)
                    + 2 * T * 4 + 2 * T * row_bytes + (2 << 20))
        vmem_limit = None
        if est_vmem > (12 << 20):       # v5e default scoped limit is only 16 MiB
            vmem_limit = int(min(est_vmem + est_vmem // 4, vmem_budget))

        return pl.pallas_call(
            kernel,
            out_shape=jax.ShapeDtypeStruct((N_pad, H), out_dtype),
            grid_spec=grid_spec,
            compiler_params=pltpu.CompilerParams(
                dimension_semantics=("parallel",),
                vmem_limit_bytes=vmem_limit,
            ),
            cost_estimate=cost,
        )

    # Call-arg order is identical for both configurations:
    #   optimized: prefetch=(mod ids);        inputs=(ids_flat[SMEM], ids_col, table, mods)
    #   fallback : prefetch=(mod ids, ids_flat); inputs=(ids_col, table, mods)
    args = (mod_token_ids, ids_flat, ids_col, embedding_table, mod_embeddings)
    try:
        out_flat = jax.block_until_ready(build(optimized=True)(*args))
    except Exception:
        out_flat = jax.block_until_ready(build(optimized=False)(*args))

    return out_flat[:N].reshape(B, S, H)


if __name__ == "__main__":
    # Small deterministic setup: vocab=64, hidden=32, batch=2, seq=8.
    key = jax.random.PRNGKey(0)
    k_table, k_ids, k_mod0, k_mod1 = jax.random.split(key, 4)

    VOCAB, HIDDEN = 64, 32
    B, S = 2, 8

    embedding_table = jax.random.normal(k_table, (VOCAB, HIDDEN), dtype=jnp.float32)

    input_ids = jax.random.randint(k_ids, (B, S), 0, VOCAB, dtype=jnp.int32)
    # Make sure the modified tokens actually appear in the input.
    input_ids = input_ids.at[0, 1].set(3).at[1, 5].set(7).at[0, 6].set(3)

    # Two modifications (as if add_modification was called twice).
    mod_token_ids = jnp.array([3, 7], dtype=jnp.int32)
    mod_embeddings = jnp.stack(
        [
            jax.random.normal(k_mod0, (HIDDEN,), dtype=jnp.float32),
            jax.random.normal(k_mod1, (HIDDEN,), dtype=jnp.float32),
        ],
        axis=0,
    )

    out = custom_embedding(input_ids, embedding_table, mod_token_ids, mod_embeddings)
    out = jax.block_until_ready(out)

    # Pure-JAX reference of the PyTorch forward.
    ref = embedding_table[input_ids]  # (B, S, H)
    for j in range(mod_token_ids.shape[0]):
        mask = (input_ids == mod_token_ids[j])[..., None]
        ref = jnp.where(mask, mod_embeddings[j][None, None, :], ref)

    assert out.shape == (B, S, HIDDEN)
    assert out.dtype == jnp.float32
    assert jnp.allclose(out, ref, atol=1e-6), "mismatch vs reference"

    print("KERNEL_OK")
</pallas_src>

<mosaic_0001>
module attributes {stable_mosaic.version = 11 : i64} {
  func.func @kernel(%arg0: i32, %arg1: memref<2xi32, #tpu.memory_space<smem>>, %arg2: memref<16xi32, #tpu.memory_space<smem>>, %arg3: memref<16x1xi32, #tpu.memory_space<vmem>>, %arg4: memref<64x32xf32, #tpu.memory_space<vmem>>, %arg5: memref<2x32xf32, #tpu.memory_space<vmem>>, %arg6: memref<16x32xf32, #tpu.memory_space<vmem>>) attributes {dimension_semantics = [#tpu.dimension_semantics<parallel>], iteration_bounds = array<i64: 1>, scalar_prefetch = 2 : i64, scratch_operands = 0 : i64, tpu.core_type = #tpu.core_type<tc>, window_params = [{transform_indices = @transform_0, window_bounds = array<i64: 16, 1>}, {pipeline_mode = #tpu.pipeline_mode<synchronous>, transform_indices = @transform_1, window_bounds = array<i64: 64, 32>}, {pipeline_mode = #tpu.pipeline_mode<synchronous>, transform_indices = @transform_2, window_bounds = array<i64: 2, 32>}, {transform_indices = @transform_3, window_bounds = array<i64: 16, 32>}]} {
    %c16_i32 = arith.constant 16 : i32
    %0 = arith.muli %arg0, %c16_i32 : i32
    %c0_i32 = arith.constant 0 : i32
    %c8_i32 = arith.constant 8 : i32
    %1 = arith.muli %c0_i32, %c8_i32 : i32
    %2 = tpu.assume_multiple %1, 8 : i32
    %3 = arith.addi %0, %2 : i32
    %c0_i32_0 = arith.constant 0 : i32
    %4 = arith.addi %3, %c0_i32_0 : i32
    %5 = arith.index_cast %4 : i32 to index
    %6 = memref.load %arg2[%5] : memref<16xi32, #tpu.memory_space<smem>>
    %c0_i32_1 = arith.constant 0 : i32
    %7 = arith.maxsi %6, %c0_i32_1 : i32
    %c63_i32 = arith.constant 63 : i32
    %8 = arith.minsi %7, %c63_i32 : i32
    %9 = arith.addi %0, %2 : i32
    %c1_i32 = arith.constant 1 : i32
    %10 = arith.addi %9, %c1_i32 : i32
    %11 = arith.index_cast %10 : i32 to index
    %12 = memref.load %arg2[%11] : memref<16xi32, #tpu.memory_space<smem>>
    %c0_i32_2 = arith.constant 0 : i32
    %13 = arith.maxsi %12, %c0_i32_2 : i32
    %c63_i32_3 = arith.constant 63 : i32
    %14 = arith.minsi %13, %c63_i32_3 : i32
    %15 = arith.addi %0, %2 : i32
    %c2_i32 = arith.constant 2 : i32
    %16 = arith.addi %15, %c2_i32 : i32
    %17 = arith.index_cast %16 : i32 to index
    %18 = memref.load %arg2[%17] : memref<16xi32, #tpu.memory_space<smem>>
    %c0_i32_4 = arith.constant 0 : i32
    %19 = arith.maxsi %18, %c0_i32_4 : i32
    %c63_i32_5 = arith.constant 63 : i32
    %20 = arith.minsi %19, %c63_i32_5 : i32
    %21 = arith.addi %0, %2 : i32
    %c3_i32 = arith.constant 3 : i32
    %22 = arith.addi %21, %c3_i32 : i32
    %23 = arith.index_cast %22 : i32 to index
    %24 = memref.load %arg2[%23] : memref<16xi32, #tpu.memory_space<smem>>
    %c0_i32_6 = arith.constant 0 : i32
    %25 = arith.maxsi %24, %c0_i32_6 : i32
    %c63_i32_7 = arith.constant 63 : i32
    %26 = arith.minsi %25, %c63_i32_7 : i32
    %27 = arith.addi %0, %2 : i32
    %c4_i32 = arith.constant 4 : i32
    %28 = arith.addi %27, %c4_i32 : i32
    %29 = arith.index_cast %28 : i32 to index
    %30 = memref.load %arg2[%29] : memref<16xi32, #tpu.memory_space<smem>>
    %c0_i32_8 = arith.constant 0 : i32
    %31 = arith.maxsi %30, %c0_i32_8 : i32
    %c63_i32_9 = arith.constant 63 : i32
    %32 = arith.minsi %31, %c63_i32_9 : i32
    %33 = arith.addi %0, %2 : i32
    %c5_i32 = arith.constant 5 : i32
    %34 = arith.addi %33, %c5_i32 : i32
    %35 = arith.index_cast %34 : i32 to index
    %36 = memref.load %arg2[%35] : memref<16xi32, #tpu.memory_space<smem>>
    %c0_i32_10 = arith.constant 0 : i32
    %37 = arith.maxsi %36, %c0_i32_10 : i32
    %c63_i32_11 = arith.constant 63 : i32
    %38 = arith.minsi %37, %c63_i32_11 : i32
    %39 = arith.addi %0, %2 : i32
    %c6_i32 = arith.constant 6 : i32
    %40 = arith.addi %39, %c6_i32 : i32
    %41 = arith.index_cast %40 : i32 to index
    %42 = memref.load %arg2[%41] : memref<16xi32, #tpu.memory_space<smem>>
    %c0_i32_12 = arith.constant 0 : i32
    %43 = arith.maxsi %42, %c0_i32_12 : i32
    %c63_i32_13 = arith.constant 63 : i32
    %44 = arith.minsi %43, %c63_i32_13 : i32
    %45 = arith.addi %0, %2 : i32
    %c7_i32 = arith.constant 7 : i32
    %46 = arith.addi %45, %c7_i32 : i32
    %47 = arith.index_cast %46 : i32 to index
    %48 = memref.load %arg2[%47] : memref<16xi32, #tpu.memory_space<smem>>
    %c0_i32_14 = arith.constant 0 : i32
    %49 = arith.maxsi %48, %c0_i32_14 : i32
    %c63_i32_15 = arith.constant 63 : i32
    %50 = arith.minsi %49, %c63_i32_15 : i32
    %51 = arith.index_cast %8 : i32 to index
    %c0 = arith.constant 0 : index
    %52 = vector.load %arg4[%51, %c0] : memref<64x32xf32, #tpu.memory_space<vmem>>, vector<1x32xf32>
    %c0_i32_16 = arith.constant 0 : i32
    %53 = arith.addi %2, %c0_i32_16 : i32
    %54 = arith.index_cast %53 : i32 to index
    %c0_17 = arith.constant 0 : index
    %55 = vector.load %arg6[%54, %c0_17] : memref<16x32xf32, #tpu.memory_space<vmem>>, vector<1x32xf32>
    tpu.vector_store %arg6[%54, %c0_17], %52 {strides = array<i32>} : memref<16x32xf32, #tpu.memory_space<vmem>>, vector<1x32xf32>,
    %56 = arith.index_cast %14 : i32 to index
    %c0_18 = arith.constant 0 : index
    %57 = vector.load %arg4[%56, %c0_18] : memref<64x32xf32, #tpu.memory_space<vmem>>, vector<1x32xf32>
    %c1_i32_19 = arith.constant 1 : i32
    %58 = arith.addi %2, %c1_i32_19 : i32
    %59 = arith.index_cast %58 : i32 to index
    %c0_20 = arith.constant 0 : index
    %60 = vector.load %arg6[%59, %c0_20] : memref<16x32xf32, #tpu.memory_space<vmem>>, vector<1x32xf32>
    tpu.vector_store %arg6[%59, %c0_20], %57 {strides = array<i32>} : memref<16x32xf32, #tpu.memory_space<vmem>>, vector<1x32xf32>,
    %61 = arith.index_cast %20 : i32 to index
    %c0_21 = arith.constant 0 : index
    %62 = vector.load %arg4[%61, %c0_21] : memref<64x32xf32, #tpu.memory_space<vmem>>, vector<1x32xf32>
    %c2_i32_22 = arith.constant 2 : i32
    %63 = arith.addi %2, %c2_i32_22 : i32
    %64 = arith.index_cast %63 : i32 to index
    %c0_23 = arith.constant 0 : index
    %65 = vector.load %arg6[%64, %c0_23] : memref<16x32xf32, #tpu.memory_space<vmem>>, vector<1x32xf32>
    tpu.vector_store %arg6[%64, %c0_23], %62 {strides = array<i32>} : memref<16x32xf32, #tpu.memory_space<vmem>>, vector<1x32xf32>,
    %66 = arith.index_cast %26 : i32 to index
    %c0_24 = arith.constant 0 : index
    %67 = vector.load %arg4[%66, %c0_24] : memref<64x32xf32, #tpu.memory_space<vmem>>, vector<1x32xf32>
    %c3_i32_25 = arith.constant 3 : i32
    %68 = arith.addi %2, %c3_i32_25 : i32
    %69 = arith.index_cast %68 : i32 to index
    %c0_26 = arith.constant 0 : index
    %70 = vector.load %arg6[%69, %c0_26] : memref<16x32xf32, #tpu.memory_space<vmem>>, vector<1x32xf32>
    tpu.vector_store %arg6[%69, %c0_26], %67 {strides = array<i32>} : memref<16x32xf32, #tpu.memory_space<vmem>>, vector<1x32xf32>,
    %71 = arith.index_cast %32 : i32 to index
    %c0_27 = arith.constant 0 : index
    %72 = vector.load %arg4[%71, %c0_27] : memref<64x32xf32, #tpu.memory_space<vmem>>, vector<1x32xf32>
    %c4_i32_28 = arith.constant 4 : i32
    %73 = arith.addi %2, %c4_i32_28 : i32
    %74 = arith.index_cast %73 : i32 to index
    %c0_29 = arith.constant 0 : index
    %75 = vector.load %arg6[%74, %c0_29] : memref<16x32xf32, #tpu.memory_space<vmem>>, vector<1x32xf32>
    tpu.vector_store %arg6[%74, %c0_29], %72 {strides = array<i32>} : memref<16x32xf32, #tpu.memory_space<vmem>>, vector<1x32xf32>,
    %76 = arith.index_cast %38 : i32 to index
    %c0_30 = arith.constant 0 : index
    %77 = vector.load %arg4[%76, %c0_30] : memref<64x32xf32, #tpu.memory_space<vmem>>, vector<1x32xf32>
    %c5_i32_31 = arith.constant 5 : i32
    %78 = arith.addi %2, %c5_i32_31 : i32
    %79 = arith.index_cast %78 : i32 to index
    %c0_32 = arith.constant 0 : index
    %80 = vector.load %arg6[%79, %c0_32] : memref<16x32xf32, #tpu.memory_space<vmem>>, vector<1x32xf32>
    tpu.vector_store %arg6[%79, %c0_32], %77 {strides = array<i32>} : memref<16x32xf32, #tpu.memory_space<vmem>>, vector<1x32xf32>,
    %81 = arith.index_cast %44 : i32 to index
    %c0_33 = arith.constant 0 : index
    %82 = vector.load %arg4[%81, %c0_33] : memref<64x32xf32, #tpu.memory_space<vmem>>, vector<1x32xf32>
    %c6_i32_34 = arith.constant 6 : i32
    %83 = arith.addi %2, %c6_i32_34 : i32
    %84 = arith.index_cast %83 : i32 to index
    %c0_35 = arith.constant 0 : index
    %85 = vector.load %arg6[%84, %c0_35] : memref<16x32xf32, #tpu.memory_space<vmem>>, vector<1x32xf32>
    tpu.vector_store %arg6[%84, %c0_35], %82 {strides = array<i32>} : memref<16x32xf32, #tpu.memory_space<vmem>>, vector<1x32xf32>,
    %86 = arith.index_cast %50 : i32 to index
    %c0_36 = arith.constant 0 : index
    %87 = vector.load %arg4[%86, %c0_36] : memref<64x32xf32, #tpu.memory_space<vmem>>, vector<1x32xf32>
    %c7_i32_37 = arith.constant 7 : i32
    %88 = arith.addi %2, %c7_i32_37 : i32
    %89 = arith.index_cast %88 : i32 to index
    %c0_38 = arith.constant 0 : index
    %90 = vector.load %arg6[%89, %c0_38] : memref<16x32xf32, #tpu.memory_space<vmem>>, vector<1x32xf32>
    tpu.vector_store %arg6[%89, %c0_38], %87 {strides = array<i32>} : memref<16x32xf32, #tpu.memory_space<vmem>>, vector<1x32xf32>,
    %c1_i32_39 = arith.constant 1 : i32
    %c8_i32_40 = arith.constant 8 : i32
    %91 = arith.muli %c1_i32_39, %c8_i32_40 : i32
    %92 = tpu.assume_multiple %91, 8 : i32
    %93 = arith.addi %0, %92 : i32
    %c0_i32_41 = arith.constant 0 : i32
    %94 = arith.addi %93, %c0_i32_41 : i32
    %95 = arith.index_cast %94 : i32 to index
    %96 = memref.load %arg2[%95] : memref<16xi32, #tpu.memory_space<smem>>
    %c0_i32_42 = arith.constant 0 : i32
    %97 = arith.maxsi %96, %c0_i32_42 : i32
    %c63_i32_43 = arith.constant 63 : i32
    %98 = arith.minsi %97, %c63_i32_43 : i32
    %99 = arith.addi %0, %92 : i32
    %c1_i32_44 = arith.constant 1 : i32
    %100 = arith.addi %99, %c1_i32_44 : i32
    %101 = arith.index_cast %100 : i32 to index
    %102 = memref.load %arg2[%101] : memref<16xi32, #tpu.memory_space<smem>>
    %c0_i32_45 = arith.constant 0 : i32
    %103 = arith.maxsi %102, %c0_i32_45 : i32
    %c63_i32_46 = arith.constant 63 : i32
    %104 = arith.minsi %103, %c63_i32_46 : i32
    %105 = arith.addi %0, %92 : i32
    %c2_i32_47 = arith.constant 2 : i32
    %106 = arith.addi %105, %c2_i32_47 : i32
    %107 = arith.index_cast %106 : i32 to index
    %108 = memref.load %arg2[%107] : memref<16xi32, #tpu.memory_space<smem>>
    %c0_i32_48 = arith.constant 0 : i32
    %109 = arith.maxsi %108, %c0_i32_48 : i32
    %c63_i32_49 = arith.constant 63 : i32
    %110 = arith.minsi %109, %c63_i32_49 : i32
    %111 = arith.addi %0, %92 : i32
    %c3_i32_50 = arith.constant 3 : i32
    %112 = arith.addi %111, %c3_i32_50 : i32
    %113 = arith.index_cast %112 : i32 to index
    %114 = memref.load %arg2[%113] : memref<16xi32, #tpu.memory_space<smem>>
    %c0_i32_51 = arith.constant 0 : i32
    %115 = arith.maxsi %114, %c0_i32_51 : i32
    %c63_i32_52 = arith.constant 63 : i32
    %116 = arith.minsi %115, %c63_i32_52 : i32
    %117 = arith.addi %0, %92 : i32
    %c4_i32_53 = arith.constant 4 : i32
    %118 = arith.addi %117, %c4_i32_53 : i32
    %119 = arith.index_cast %118 : i32 to index
    %120 = memref.load %arg2[%119] : memref<16xi32, #tpu.memory_space<smem>>
    %c0_i32_54 = arith.constant 0 : i32
    %121 = arith.maxsi %120, %c0_i32_54 : i32
    %c63_i32_55 = arith.constant 63 : i32
    %122 = arith.minsi %121, %c63_i32_55 : i32
    %123 = arith.addi %0, %92 : i32
    %c5_i32_56 = arith.constant 5 : i32
    %124 = arith.addi %123, %c5_i32_56 : i32
    %125 = arith.index_cast %124 : i32 to index
    %126 = memref.load %arg2[%125] : memref<16xi32, #tpu.memory_space<smem>>
    %c0_i32_57 = arith.constant 0 : i32
    %127 = arith.maxsi %126, %c0_i32_57 : i32
    %c63_i32_58 = arith.constant 63 : i32
    %128 = arith.minsi %127, %c63_i32_58 : i32
    %129 = arith.addi %0, %92 : i32
    %c6_i32_59 = arith.constant 6 : i32
    %130 = arith.addi %129, %c6_i32_59 : i32
    %131 = arith.index_cast %130 : i32 to index
    %132 = memref.load %arg2[%131] : memref<16xi32, #tpu.memory_space<smem>>
    %c0_i32_60 = arith.constant 0 : i32
    %133 = arith.maxsi %132, %c0_i32_60 : i32
    %c63_i32_61 = arith.constant 63 : i32
    %134 = arith.minsi %133, %c63_i32_61 : i32
    %135 = arith.addi %0, %92 : i32
    %c7_i32_62 = arith.constant 7 : i32
    %136 = arith.addi %135, %c7_i32_62 : i32
    %137 = arith.index_cast %136 : i32 to index
    %138 = memref.load %arg2[%137] : memref<16xi32, #tpu.memory_space<smem>>
    %c0_i32_63 = arith.constant 0 : i32
    %139 = arith.maxsi %138, %c0_i32_63 : i32
    %c63_i32_64 = arith.constant 63 : i32
    %140 = arith.minsi %139, %c63_i32_64 : i32
    %141 = arith.index_cast %98 : i32 to index
    %c0_65 = arith.constant 0 : index
    %142 = vector.load %arg4[%141, %c0_65] : memref<64x32xf32, #tpu.memory_space<vmem>>, vector<1x32xf32>
    %c0_i32_66 = arith.constant 0 : i32
    %143 = arith.addi %92, %c0_i32_66 : i32
    %144 = arith.index_cast %143 : i32 to index
    %c0_67 = arith.constant 0 : index
    %145 = vector.load %arg6[%144, %c0_67] : memref<16x32xf32, #tpu.memory_space<vmem>>, vector<1x32xf32>
    tpu.vector_store %arg6[%144, %c0_67], %142 {strides = array<i32>} : memref<16x32xf32, #tpu.memory_space<vmem>>, vector<1x32xf32>,
    %146 = arith.index_cast %104 : i32 to index
    %c0_68 = arith.constant 0 : index
    %147 = vector.load %arg4[%146, %c0_68] : memref<64x32xf32, #tpu.memory_space<vmem>>, vector<1x32xf32>
    %c1_i32_69 = arith.constant 1 : i32
    %148 = arith.addi %92, %c1_i32_69 : i32
    %149 = arith.index_cast %148 : i32 to index
    %c0_70 = arith.constant 0 : index
    %150 = vector.load %arg6[%149, %c0_70] : memref<16x32xf32, #tpu.memory_space<vmem>>, vector<1x32xf32>
    tpu.vector_store %arg6[%149, %c0_70], %147 {strides = array<i32>} : memref<16x32xf32, #tpu.memory_space<vmem>>, vector<1x32xf32>,
    %151 = arith.index_cast %110 : i32 to index
    %c0_71 = arith.constant 0 : index
    %152 = vector.load %arg4[%151, %c0_71] : memref<64x32xf32, #tpu.memory_space<vmem>>, vector<1x32xf32>
    %c2_i32_72 = arith.constant 2 : i32
    %153 = arith.addi %92, %c2_i32_72 : i32
    %154 = arith.index_cast %153 : i32 to index
    %c0_73 = arith.constant 0 : index
    %155 = vector.load %arg6[%154, %c0_73] : memref<16x32xf32, #tpu.memory_space<vmem>>, vector<1x32xf32>
    tpu.vector_store %arg6[%154, %c0_73], %152 {strides = array<i32>} : memref<16x32xf32, #tpu.memory_space<vmem>>, vector<1x32xf32>,
    %156 = arith.index_cast %116 : i32 to index
    %c0_74 = arith.constant 0 : index
    %157 = vector.load %arg4[%156, %c0_74] : memref<64x32xf32, #tpu.memory_space<vmem>>, vector<1x32xf32>
    %c3_i32_75 = arith.constant 3 : i32
    %158 = arith.addi %92, %c3_i32_75 : i32
    %159 = arith.index_cast %158 : i32 to index
    %c0_76 = arith.constant 0 : index
    %160 = vector.load %arg6[%159, %c0_76] : memref<16x32xf32, #tpu.memory_space<vmem>>, vector<1x32xf32>
    tpu.vector_store %arg6[%159, %c0_76], %157 {strides = array<i32>} : memref<16x32xf32, #tpu.memory_space<vmem>>, vector<1x32xf32>,
    %161 = arith.index_cast %122 : i32 to index
    %c0_77 = arith.constant 0 : index
    %162 = vector.load %arg4[%161, %c0_77] : memref<64x32xf32, #tpu.memory_space<vmem>>, vector<1x32xf32>
    %c4_i32_78 = arith.constant 4 : i32
    %163 = arith.addi %92, %c4_i32_78 : i32
    %164 = arith.index_cast %163 : i32 to index
    %c0_79 = arith.constant 0 : index
    %165 = vector.load %arg6[%164, %c0_79] : memref<16x32xf32, #tpu.memory_space<vmem>>, vector<1x32xf32>
    tpu.vector_store %arg6[%164, %c0_79], %162 {strides = array<i32>} : memref<16x32xf32, #tpu.memory_space<vmem>>, vector<1x32xf32>,
    %166 = arith.index_cast %128 : i32 to index
    %c0_80 = arith.constant 0 : index
    %167 = vector.load %arg4[%166, %c0_80] : memref<64x32xf32, #tpu.memory_space<vmem>>, vector<1x32xf32>
    %c5_i32_81 = arith.constant 5 : i32
    %168 = arith.addi %92, %c5_i32_81 : i32
    %169 = arith.index_cast %168 : i32 to index
    %c0_82 = arith.constant 0 : index
    %170 = vector.load %arg6[%169, %c0_82] : memref<16x32xf32, #tpu.memory_space<vmem>>, vector<1x32xf32>
    tpu.vector_store %arg6[%169, %c0_82], %167 {strides = array<i32>} : memref<16x32xf32, #tpu.memory_space<vmem>>, vector<1x32xf32>,
    %171 = arith.index_cast %134 : i32 to index
    %c0_83 = arith.constant 0 : index
    %172 = vector.load %arg4[%171, %c0_83] : memref<64x32xf32, #tpu.memory_space<vmem>>, vector<1x32xf32>
    %c6_i32_84 = arith.constant 6 : i32
    %173 = arith.addi %92, %c6_i32_84 : i32
    %174 = arith.index_cast %173 : i32 to index
    %c0_85 = arith.constant 0 : index
    %175 = vector.load %arg6[%174, %c0_85] : memref<16x32xf32, #tpu.memory_space<vmem>>, vector<1x32xf32>
    tpu.vector_store %arg6[%174, %c0_85], %172 {strides = array<i32>} : memref<16x32xf32, #tpu.memory_space<vmem>>, vector<1x32xf32>,
    %176 = arith.index_cast %140 : i32 to index
    %c0_86 = arith.constant 0 : index
    %177 = vector.load %arg4[%176, %c0_86] : memref<64x32xf32, #tpu.memory_space<vmem>>, vector<1x32xf32>
    %c7_i32_87 = arith.constant 7 : i32
    %178 = arith.addi %92, %c7_i32_87 : i32
    %179 = arith.index_cast %178 : i32 to index
    %c0_88 = arith.constant 0 : index
    %180 = vector.load %arg6[%179, %c0_88] : memref<16x32xf32, #tpu.memory_space<vmem>>, vector<1x32xf32>
    tpu.vector_store %arg6[%179, %c0_88], %177 {strides = array<i32>} : memref<16x32xf32, #tpu.memory_space<vmem>>, vector<1x32xf32>,
    %c2_i32_89 = arith.constant 2 : i32
    %c0_90 = arith.constant 0 : index
    %c0_91 = arith.constant 0 : index
    %181 = vector.load %arg6[%c0_90, %c0_91] : memref<16x32xf32, #tpu.memory_space<vmem>>, vector<16x32xf32>
    %c0_92 = arith.constant 0 : index
    %c0_93 = arith.constant 0 : index
    %182 = vector.load %arg3[%c0_92, %c0_93] : memref<16x1xi32, #tpu.memory_space<vmem>>, vector<16x1xi32>
    %c0_94 = arith.constant 0 : index
    %183 = memref.load %arg1[%c0_94] : memref<2xi32, #tpu.memory_space<smem>>
    %184 = vector.broadcast %183 : i32 to vector<16x1xi32>
    %185 = arith.cmpi eq, %182, %184 : vector<16x1xi32>
    %c0_95 = arith.constant 0 : index
    %c0_96 = arith.constant 0 : index
    %186 = vector.load %arg5[%c0_95, %c0_96] : memref<2x32xf32, #tpu.memory_space<vmem>>, vector<1x32xf32>
    %187 = vector.shape_cast %185 : vector<16x1xi1> to vector<16x1xi1>
    %188 = vector.broadcast %187 : vector<16x1xi1> to vector<16x32xi1>
    %189 = vector.shape_cast %186 : vector<1x32xf32> to vector<1x32xf32>
    %190 = vector.broadcast %189 : vector<1x32xf32> to vector<16x32xf32>
    %191 = arith.select %188, %190, %181 : vector<16x32xi1>, vector<16x32xf32>
    %c1 = arith.constant 1 : index
    %192 = memref.load %arg1[%c1] : memref<2xi32, #tpu.memory_space<smem>>
    %193 = vector.broadcast %192 : i32 to vector<16x1xi32>
    %194 = arith.cmpi eq, %182, %193 : vector<16x1xi32>
    %c1_97 = arith.constant 1 : index
    %c0_98 = arith.constant 0 : index
    %195 = vector.load %arg5[%c1_97, %c0_98] : memref<2x32xf32, #tpu.memory_space<vmem>>, vector<1x32xf32>
    %196 = vector.shape_cast %194 : vector<16x1xi1> to vector<16x1xi1>
    %197 = vector.broadcast %196 : vector<16x1xi1> to vector<16x32xi1>
    %198 = vector.shape_cast %195 : vector<1x32xf32> to vector<1x32xf32>
    %199 = vector.broadcast %198 : vector<1x32xf32> to vector<16x32xf32>
    %200 = arith.select %197, %199, %191 : vector<16x32xi1>, vector<16x32xf32>
    %c0_99 = arith.constant 0 : index
    %c0_100 = arith.constant 0 : index
    %201 = vector.load %arg6[%c0_99, %c0_100] : memref<16x32xf32, #tpu.memory_space<vmem>>, vector<16x32xf32>
    tpu.vector_store %arg6[%c0_99, %c0_100], %200 {strides = array<i32>} : memref<16x32xf32, #tpu.memory_space<vmem>>, vector<16x32xf32>,
    return
  }
  func.func @transform_0(%arg0: i32, %arg1: memref<2xi32, #tpu.memory_space<smem>>, %arg2: memref<16xi32, #tpu.memory_space<smem>>) -> (i32, i32) {
    %c0_i32 = arith.constant 0 : i32
    %c0_i32_0 = arith.constant 0 : i32
    return %arg0, %c0_i32 : i32, i32
  }
  func.func @transform_1(%arg0: i32, %arg1: memref<2xi32, #tpu.memory_space<smem>>, %arg2: memref<16xi32, #tpu.memory_space<smem>>) -> (i32, i32) {
    %c0_i32 = arith.constant 0 : i32
    %c0_i32_0 = arith.constant 0 : i32
    %c0_i32_1 = arith.constant 0 : i32
    return %c0_i32, %c0_i32_0 : i32, i32
  }
  func.func @transform_2(%arg0: i32, %arg1: memref<2xi32, #tpu.memory_space<smem>>, %arg2: memref<16xi32, #tpu.memory_space<smem>>) -> (i32, i32) {
    %c0_i32 = arith.constant 0 : i32
    %c0_i32_0 = arith.constant 0 : i32
    %c0_i32_1 = arith.constant 0 : i32
    return %c0_i32, %c0_i32_0 : i32, i32
  }
  func.func @transform_3(%arg0: i32, %arg1: memref<2xi32, #tpu.memory_space<smem>>, %arg2: memref<16xi32, #tpu.memory_space<smem>>) -> (i32, i32) {
    %c0_i32 = arith.constant 0 : i32
    %c0_i32_0 = arith.constant 0 : i32
    return %arg0, %c0_i32 : i32, i32
  }
}

</mosaic_0001>

<bundles_post_ra>
// kernel: tpu_custom_call.1
= control target key start
LH: loop header
LB: loop body
LE: loop exit
PB: predicated region body
PF: predicated region fallthrough
CT: control target
= control target key end

     0   :  { %s681_s0 = inlined_call_operand.vmem [shape: s32[2], index: 0, kind: input, shape index: {}]   ;;  %s682_s2 = inlined_call_operand.vmem [shape: s32[16,1], index: 2, kind: input, shape index: {}]   ;;  %s683_s3 = inlined_call_operand.vmem [shape: f32[64,32], index: 3, kind: input, shape index: {}]   ;;  %s684_s4 = inlined_call_operand.vmem [shape: f32[2,32], index: 4, kind: input, shape index: {}]   ;;  %s685_s5 = inlined_call_operand.hbm [shape: f32[16,32], index: 5, kind: output, shape index: {}]   ;;  %s686_s1 = inlined_call_operand.vmem [shape: s32[16], index: 1, kind: input, shape index: {}]  }
   0x1   :  { %s10_s20 = sshll.u32 %s681_s0, 4  ;;  %s14_s23 = sshll.u32 %s686_s1, 4  ;;  %s11_s20 = int_to_ptr.vmem [resolvable:$true] %s10_s20  ;;  %s15_s23 = int_to_ptr.vmem [resolvable:$true] %s14_s23 }
   0x2   :  { %s435_s24 = scalar_lea.vmem %s11_s20, 16  ;;  %p440_p1 = scmp.lt.s32.totalorder %s11_s20, %s11_s20 }
   0x3   :  { %p436_p0 = scmp.ne.s32.totalorder %s11_s20, %s435_s24  ;;  %p441_p2 = scmp.lt.s32.totalorder %s435_s24, %s435_s24 }
   0x5   :  { %p442_p3 = por %p441_p2, %p440_p1 }
   0x7   :  { %p443_p4 = pnand %p442_p3, %p436_p0 }
   0x9   :  { %446 = shalt.err (!%p443_p4)  }
   0xa   :  { %s485_s25 = smov [#allocation3]   ;;  %s447_s26 = scalar_lea.vmem %s15_s23, 16 }
   0xb   :  { %13 = dma.vmem_to_smem %s11_s20, 16, %s485_s25, [#allocation2] }
   0xc   :  { %p448_p5 = scmp.ne.s32.totalorder %s15_s23, %s447_s26  ;;  %p452_p6 = scmp.lt.s32.totalorder %s15_s23, %s15_s23 }
   0xd   :  { %p453_p7 = scmp.lt.s32.totalorder %s447_s26, %s447_s26 }
   0xf   :  { %p454_p8 = por %p453_p7, %p452_p6 }
  0x11   :  { %p455_p9 = pnand %p454_p8, %p448_p5 }
  0x13   :  { %458 = shalt.err (!%p455_p9)  }
  0x14   :  { %s486_s0 = smov [#allocation4]  }
  0x15   :  { %17 = dma.vmem_to_smem %s15_s23, 16, %s486_s0, [#allocation2] }
  0x16   :  { %481 = dma.done.wait [#allocation2], 32 }
  0x17   :  { %482 = vsyncadd [#allocation2], 4294967264 }
  0x18   :  { %19 = sfence }
  0x19   :  { %s393_s1 = sld [smem:[#allocation3 + $0x1]]  ;;  %s206_s27 = sld [smem:[#allocation3]]  ;;  %v487_v0 = vmov 0  }
  0x1a   :  { %434 = vset.pattern.permute.xlu1 %v487_v0  ;;  %433 = vset.pattern.permute.xlu0 %v487_v0  ;;  %s527_s28 = sld [smem:[#allocation4]]  ;;  %s529_s29 = sld [smem:[#allocation4 + $0x1]] }
  0x1b   :  { %s531_s30 = sld [smem:[#allocation4 + $0x2]]  ;;  %s533_s6 = sld [smem:[#allocation4 + $0x3]] }
  0x1c   :  { %20 = vsyncpa [#allocation6], 0  ;;  %s535_s7 = sld [smem:[#allocation4 + $0x4]]  ;;  %s537_s8 = sld [smem:[#allocation4 + $0x5]]  ;;  %v204_v1 = vld [vmem:[%s682_s2] sm:$0xff]  ;;  %v205_v2 = vld [vmem:[%s682_s2 + $0x8] sm:$0xff] }
  0x1d   :  { %s545_s13 = sld [smem:[#allocation4 + $0x6]]  ;;  %s547_s14 = sld [smem:[#allocation4 + $0x7]]  ;;  %vm78_vm4 = vcmask 253952   ;;  %v392_v25 = vld [vmem:[%s684_s4] ss:$0 sm:$0xff]  ;;  %vm248_vm7 = vcmask 261120  }
  0x1e   :  { %s549_s15 = sld [smem:[#allocation4 + $0x8]]  ;;  %s551_s16 = sld [smem:[#allocation4 + $0x9]]  ;;  %v394_v28 = vld [vmem:[%s684_s4 + $0x1] ss:$0 sm:$0xff] }
  0x1f   :  { %v228_v3 = vstv %s393_s1  ;;  %v207_v4 = vstv %s206_s27  ;;  %s553_s17 = sld [smem:[#allocation4 + $0xa]]  ;;  %s555_s18 = sld [smem:[#allocation4 + $0xb]] }
  0x20   :  { %vm229_vm0 = vcmp.eq.s32.totalorder %v204_v1, %v228_v3  ;;  %vm208_vm1 = vcmp.eq.s32.totalorder %v204_v1, %v207_v4  ;;  %vm230_vm2 = vcmp.eq.s32.totalorder %v205_v2, %v228_v3  ;;  %vm209_vm3 = vcmp.eq.s32.totalorder %v205_v2, %v207_v4  ;;  %p30_p10 = scmp.gt.s32.totalorder %s527_s28, 0  ;;  %p297_p11 = scmp.lt.s32.totalorder %s527_s28, 63 }
  0x21   :  { %v232_v5 = vsel %vm229_vm0, 1, %v487_v0  ;;  %v211_v6 = vsel %vm208_vm1, 1, %v487_v0  ;;  %p36_p12 = scmp.gt.s32.totalorder %s529_s29, 0  ;;  %p303_p13 = scmp.lt.s32.totalorder %s529_s29, 63  ;;  %v233_v7 = vsel %vm230_vm2, 1, %v487_v0  ;;  %v212_v8 = vsel %vm209_vm3, 1, %v487_v0 }
  0x22   :  { %235 = vperm.xlu1 %434, %v232_v5   ;;  %214 = vperm.xlu0 %433, %v211_v6   ;;  %s688_s28 = smov (!%p30_p10, %s527_s28), 0  ;;  %p42_p0 = scmp.gt.s32.totalorder %s531_s30, 0 }
  0x23   :  { %s690_s29 = smov (!%p36_p12, %s529_s29), 0  ;;  %s692_s28 = smov (!%p297_p11, %s688_s28), 63 }
  0x24   :  { %s694_s29 = smov (!%p303_p13, %s690_s29), 63  ;;  %p309_p1 = scmp.lt.s32.totalorder %s531_s30, 63 }
  0x25   :  { %p48_p2 = scmp.gt.s32.totalorder %s533_s6, 0  ;;  %p315_p3 = scmp.lt.s32.totalorder %s533_s6, 63 }
  0x26   :  { %238 = vperm.xlu1 %434, %v233_v7   ;;  %217 = vperm.xlu0 %433, %v212_v8   ;;  %s696_s30 = smov (!%p42_p0, %s531_s30), 0  ;;  %p54_p4 = scmp.gt.s32.totalorder %s535_s7, 0 }
  0x27   :  { %s698_s6 = smov (!%p48_p2, %s533_s6), 0  ;;  %s700_s30 = smov (!%p309_p1, %s696_s30), 63 }
  0x28   :  { %s702_s6 = smov (!%p315_p3, %s698_s6), 63  ;;  %p321_p5 = scmp.lt.s32.totalorder %s535_s7, 63 }
  0x29   :  { %p60_p6 = scmp.gt.s32.totalorder %s537_s8, 0  ;;  %p327_p7 = scmp.lt.s32.totalorder %s537_s8, 63 }
  0x2a   :  { %s704_s7 = smov (!%p54_p4, %s535_s7), 0  ;;  %p66_p8 = scmp.gt.s32.totalorder %s545_s13, 0 }
  0x2b   :  { %s706_s8 = smov (!%p60_p6, %s537_s8), 0  ;;  %s708_s7 = smov (!%p321_p5, %s704_s7), 63 }
  0x2c   :  { %s710_s8 = smov (!%p327_p7, %s706_s8), 63  ;;  %p333_p9 = scmp.lt.s32.totalorder %s545_s13, 63 }
  0x2d   :  { %p72_p10 = scmp.gt.s32.totalorder %s547_s14, 0  ;;  %p339_p11 = scmp.lt.s32.totalorder %s547_s14, 63 }
  0x2e   :  { %s712_s13 = smov (!%p66_p8, %s545_s13), 0  ;;  %s76_s20 = scalar_lea.vmem %s683_s3, %s692_s28 }
  0x2f   :  { %s714_s14 = smov (!%p72_p10, %s547_s14), 0  ;;  %s716_s13 = smov (!%p333_p9, %s712_s13), 63  ;;  %v77_v9 = vld [vmem:[%s76_s20] sm:$0x1] }
  0x30   :  { %s718_s14 = smov (!%p339_p11, %s714_s14), 63  ;;  %s80_s23 = scalar_lea.vmem %s683_s3, %s694_s29  ;;  %79 = vst.msk [vmem:[#allocation5] sm:$0x1] %vm78_vm4, %v77_v9 }
  0x31   :  { %v81_v10 = vld [vmem:[%s80_s23] sm:$0x1]  ;;  %s85_s26 = scalar_lea.vmem %s683_s3, %s700_s30  ;;  %s90_s27 = scalar_lea.vmem %s683_s3, %s702_s6 }
  0x32   :  { %84 = vst.msk [vmem:[#allocation5 + $0x1] sm:$0x1] %vm78_vm4, %v81_v10  ;;  %v86_v11 = vld [vmem:[%s85_s26] sm:$0x1]  ;;  %s95_s9 = scalar_lea.vmem %s683_s3, %s708_s7  ;;  %s100_s30 = scalar_lea.vmem %s683_s3, %s710_s8 }
  0x33   :  { %v91_v12 = vld [vmem:[%s90_s27] sm:$0x1]  ;;  %89 = vst.msk [vmem:[#allocation5 + $0x2] sm:$0x1] %vm78_vm4, %v86_v11  ;;  %s105_s2 = scalar_lea.vmem %s683_s3, %s716_s13  ;;  %s110_s20 = scalar_lea.vmem %s683_s3, %s718_s14 }
  0x34   :  { %94 = vst.msk [vmem:[#allocation5 + $0x3] sm:$0x1] %vm78_vm4, %v91_v12  ;;  %v96_v13 = vld [vmem:[%s95_s9] sm:$0x1]  ;;  %p117_p12 = scmp.gt.s32.totalorder %s549_s15, 0  ;;  %p345_p13 = scmp.lt.s32.totalorder %s549_s15, 63 }
  0x35   :  { %v101_v14 = vld [vmem:[%s100_s30] sm:$0x1]  ;;  %99 = vst.msk [vmem:[#allocation5 + $0x4] sm:$0x1] %vm78_vm4, %v96_v13  ;;  %p123_p0 = scmp.gt.s32.totalorder %s551_s16, 0  ;;  %p351_p1 = scmp.lt.s32.totalorder %s551_s16, 63 }
  0x36   :  { %104 = vst.msk [vmem:[#allocation5 + $0x5] sm:$0x1] %vm78_vm4, %v101_v14  ;;  %v106_v15 = vld [vmem:[%s105_s2] sm:$0x1]  ;;  %s720_s15 = smov (!%p117_p12, %s549_s15), 0  ;;  %p129_p2 = scmp.gt.s32.totalorder %s553_s17, 0 }
  0x37   :  { %v111_v16 = vld [vmem:[%s110_s20] sm:$0x1]  ;;  %109 = vst.msk [vmem:[#allocation5 + $0x6] sm:$0x1] %vm78_vm4, %v106_v15  ;;  %s722_s16 = smov (!%p123_p0, %s551_s16), 0  ;;  %s724_s15 = smov (!%p345_p13, %s720_s15), 63 }
  0x38   :  { %114 = vst.msk [vmem:[#allocation5 + $0x7] sm:$0x1] %vm78_vm4, %v111_v16  ;;  %s726_s16 = smov (!%p351_p1, %s722_s16), 63  ;;  %p357_p3 = scmp.lt.s32.totalorder %s553_s17, 63 }
  0x39   :  { %p135_p4 = scmp.gt.s32.totalorder %s555_s18, 0  ;;  %p363_p5 = scmp.lt.s32.totalorder %s555_s18, 63 }
  0x3a   :  { %s728_s17 = smov (!%p129_p2, %s553_s17), 0  ;;  %s368_s8 = sld [smem:[#allocation4 + $0xc]] }
  0x3b   :  { %s730_s18 = smov (!%p135_p4, %s555_s18), 0  ;;  %s732_s17 = smov (!%p357_p3, %s728_s17), 63 }
  0x3c   :  { %s734_s18 = smov (!%p363_p5, %s730_s18), 63  ;;  %s374_s13 = sld [smem:[#allocation4 + $0xd]] }
  0x3d   :  { %s163_s22 = scalar_lea.vmem %s683_s3, %s724_s15  ;;  %s167_s25 = scalar_lea.vmem %s683_s3, %s726_s16 }
  0x3e   :  { %v164_v17 = vld [vmem:[%s163_s22] sm:$0x1]  ;;  %s172_s1 = scalar_lea.vmem %s683_s3, %s732_s17  ;;  %s177_s29 = scalar_lea.vmem %s683_s3, %s734_s18 }
  0x3f   :  { %v168_v18 = vld [vmem:[%s167_s25] sm:$0x1]  ;;  %s380_s9 = sld [smem:[#allocation4 + $0xe]]  ;;  %166 = vst.msk [vmem:[#allocation5 + $0x8] sm:$0x1] %vm78_vm4, %v164_v17  ;;  %s386_s15 = sld [smem:[#allocation4 + $0xf]] }
  0x40   :  { %171 = vst.msk [vmem:[#allocation5 + $0x9] sm:$0x1] %vm78_vm4, %v168_v18  ;;  %v173_v19 = vld [vmem:[%s172_s1] sm:$0x1]  ;;  %p141_p6 = scmp.gt.s32.totalorder %s368_s8, 0  ;;  %p369_p7 = scmp.lt.s32.totalorder %s368_s8, 63 }
  0x41   :  { %v178_v20 = vld [vmem:[%s177_s29] sm:$0x1]  ;;  %176 = vst.msk [vmem:[#allocation5 + $0xa] sm:$0x1] %vm78_vm4, %v173_v19 }
  0x42   :  { %181 = vst.msk [vmem:[#allocation5 + $0xb] sm:$0x1] %vm78_vm4, %v178_v20  ;;  %p147_p8 = scmp.gt.s32.totalorder %s374_s13, 0  ;;  %p375_p9 = scmp.lt.s32.totalorder %s374_s13, 63  ;;  %v202_v26 = vld [vmem:[#allocation5] sm:$0xff] }
  0x43   :  { %s736_s8 = smov (!%p141_p6, %s368_s8), 0 }
  0x44   :  { %s738_s13 = smov (!%p147_p8, %s374_s13), 0  ;;  %s740_s8 = smov (!%p369_p7, %s736_s8), 63 }
  0x45   :  { %s742_s13 = smov (!%p375_p9, %s738_s13), 63  ;;  %p153_p10 = scmp.gt.s32.totalorder %s380_s9, 0 }
  0x46   :  { %p381_p11 = scmp.lt.s32.totalorder %s380_s9, 63  ;;  %p159_p12 = scmp.gt.s32.totalorder %s386_s15, 0 }
  0x47   :  { %p387_p13 = scmp.lt.s32.totalorder %s386_s15, 63  ;;  %s744_s9 = smov (!%p153_p10, %s380_s9), 0 }
  0x48   :  { %s746_s15 = smov (!%p159_p12, %s386_s15), 0  ;;  %s748_s9 = smov (!%p381_p11, %s744_s9), 63 }
  0x49   :  { %s750_s15 = smov (!%p387_p13, %s746_s15), 63  ;;  %s182_s18 = scalar_lea.vmem %s683_s3, %s740_s8 }
  0x4a   :  { %s187_s30 = scalar_lea.vmem %s683_s3, %s742_s13  ;;  %v183_v21 = vld [vmem:[%s182_s18] sm:$0x1]  ;;  %s192_s2 = scalar_lea.vmem %s683_s3, %s748_s9 }
  0x4b   :  { %v188_v22 = vld [vmem:[%s187_s30] sm:$0x1]  ;;  %s197_s20 = scalar_lea.vmem %s683_s3, %s750_s15  ;;  %186 = vst.msk [vmem:[#allocation5 + $0xc] sm:$0x1] %vm78_vm4, %v183_v21  ;;  %s488_s3 = smov [#allocation5]  }
  0x4c   :  { %191 = vst.msk [vmem:[#allocation5 + $0xd] sm:$0x1] %vm78_vm4, %v188_v22  ;;  %v193_v23 = vld [vmem:[%s192_s2] sm:$0x1]  ;;  %s256_s22 = sshll.u32 %s488_s3, 4  ;;  %s257_s22 = int_to_ptr.vmem [resolvable:$true] %s256_s22 }
  0x4d   :  { %v198_v24 = vld [vmem:[%s197_s20] sm:$0x1]  ;;  %196 = vst.msk [vmem:[#allocation5 + $0xe] sm:$0x1] %vm78_vm4, %v193_v23  ;;  %s459_s23 = scalar_lea.vmem %s257_s22, 256  ;;  %p464_p1 = scmp.lt.s32.totalorder %s257_s22, %s257_s22 }
  0x4e   :  { %201 = vst.msk [vmem:[#allocation5 + $0xf] sm:$0x1] %vm78_vm4, %v198_v24  ;;  %p460_p0 = scmp.ne.s32.totalorder %s257_s22, %s459_s23  ;;  %p465_p2 = scmp.lt.s32.totalorder %s459_s23, %s459_s23 }
  0x50   :  { %p466_p3 = por %p465_p2, %p464_p1 }
  0x52   :  { %p467_p4 = pnand %p466_p3, %p460_p0 }
  0x55   :  { %v203_v32 = vld [vmem:[#allocation5 + $0x8] sm:$0xff] }
  0xa1   :  { %v236_v27 = vpop.permute.xlu1 %235  ;;  %v215_v29 = vpop.permute.xlu0 %214 }
  0xa2   :  { %vm240_vm5 = vcmp.eq.s32.totalorder %v236_v27, 1  ;;  %vm219_vm6 = vcmp.eq.s32.totalorder %v215_v29, 1 }
  0xa3   :  { %v225_v30 = vsel %vm219_vm6, %v392_v25, %v202_v26 }
  0xa4   :  { %v246_v31 = vsel %vm240_vm5, %v394_v28, %v225_v30 }
  0xa5   :  { %v239_v33 = vpop.permute.xlu1 %238  ;;  %v218_v34 = vpop.permute.xlu0 %217  ;;  %249 = vst.msk [vmem:[#allocation5] sm:$0xff] %vm248_vm7, %v246_v31 }
  0xa6   :  { %vm241_vm8 = vcmp.eq.s32.totalorder %v239_v33, 1  ;;  %vm220_vm9 = vcmp.eq.s32.totalorder %v218_v34, 1 }
  0xa7   :  { %v226_v35 = vsel %vm220_vm9, %v392_v25, %v203_v32 }
  0xa8   :  { %v247_v36 = vsel %vm241_vm8, %v394_v28, %v226_v35 }
  0xa9   :  { %250 = vst.msk [vmem:[#allocation5 + $0x8] sm:$0xff] %vm248_vm7, %v247_v36 }
  0xaa   :  { %470 = shalt.err (!%p467_p4)
}
  0xab   :  { %s471_s25 = scalar_lea.hbm %s685_s5, 256 }
  0xac   :  { %p472_p5 = scmp.ne.s32.totalorder %s685_s5, %s471_s25  ;;  %p475_p6 = scmp.lt.u32.totalorder %s471_s25, %s685_s5 }
  0xae   :  { %p477_p7 = pnand %p475_p6, %p472_p5 }
  0xb0   :  { %480 = shalt.err (!%p477_p7)
}
  0xb1   :  { %s489_s28 = smov 128   ;;  %s490_s29 = smov 8  }
  0xb2   :  { %262 = dma.vmem_to_hbm [thread:$0]  %s257_s22, 256, %s685_s5, [#allocation6], %s489_s28, %s489_s28, %s490_s29  }
  0xb3   :  { %483 = dma.done.wait [#allocation6], 256  }
  0xb4   :  { %484 = vsyncadd [#allocation6], 4294967040 }
  0xb5   :  { %266 = vsyncpa [#allocation6], 1 }

</bundles_post_ra>
